<compile_context>
chip_gen: v5e
topology: v5e:2x2
jax: 0.10.0
libtpu: 0.0.40
codegen_flags: <defaults>
</compile_context>

<pallas_src>
import functools

import jax
import jax.numpy as jnp
from jax import lax
from jax.experimental import pallas as pl
from jax.experimental.pallas import tpu as pltpu

# Packed little-endian RGBA words. Plain Python ints on purpose: jax-Array
# constants captured by the kernel body are rejected by pallas_call
# ("captures constants"); Python scalars become jaxpr literals.
_INSIDE_WORD = -16776961   # 0xFF0000FF = (255, 0, 0, 255)
_OUTSIDE_WORD = -1         # 0xFFFFFFFF = (255, 255, 255, 255)


def _render_kernel(cx_ref, cy_ref, out_ref, *, tile_h, width, n_centers, r, r2):
    """Rasterize n_centers filled circles into one row tile of the canvas.

    cx_ref, cy_ref : SMEM float32[n_centers]  (pixel-space circle centers)
    out_ref        : VMEM int32[tile_h, width] (packed little-endian RGBA)
    """
    row0 = pl.program_id(0) * tile_h
    rows = (lax.broadcasted_iota(jnp.int32, (tile_h, 1), 0) + row0
            ).astype(jnp.float32)                                    # pixel y
    cols = lax.broadcasted_iota(jnp.int32, (1, width), 1
                                ).astype(jnp.float32)                # pixel x

    def or_center(i, mask):
        # Separable distance test with r^2 folded into the row term:
        #   (j - cx)^2 <= r^2 - (i - cy)^2
        # -> full-tile work per center is one broadcast compare + one OR.
        dy = rows - cy_ref[i]                     # (tile_h, 1)
        rhs = r2 - dy * dy                        # (tile_h, 1)
        dx = cols - cx_ref[i]                     # (1, width)
        return jnp.logical_or(mask, (dx * dx) <= rhs)   # (tile_h, width)

    zero_mask = jnp.zeros((tile_h, width), jnp.bool_)
    if n_centers == 0:
        mask = zero_mask
    elif n_centers <= 64:
        # Fully unroll the short fixed-trip loop (LLO scheduler visibility).
        mask = or_center(0, zero_mask)
        for i in range(1, n_centers):
            mask = or_center(i, mask)
    else:
        # Large point clouds: unrolled-by-8 loop with cheap per-center row
        # culling -- skip the full-tile compare when the circle cannot
        # intersect this row tile.
        tile_mid = row0.astype(jnp.float32) + (tile_h - 1) * 0.5
        cull_r = r + tile_h * 0.5   # conservative half-extent

        def body(i, m):
            hit = jnp.abs(cy_ref[i] - tile_mid) <= cull_r
            return lax.cond(hit, lambda mm: or_center(i, mm), lambda mm: mm, m)

        mask = lax.fori_loop(0, n_centers, body, zero_mask, unroll=8)

    out_ref[...] = jnp.where(mask, _INSIDE_WORD, _OUTSIDE_WORD).astype(jnp.int32)


def _round_up(x, m):
    return ((x + m - 1) // m) * m


def _pick_tile_h(height, width_pad):
    """Row-tile height from a VMEM byte budget (multiple of 8, >= 2 tiles)."""
    bytes_per_row = width_pad * 4
    budget = 8 << 20  # ~8 MiB of live tile-sized buffers (2x dbl-buffered out
                      # block + mask/select intermediates): v5e / v7x safe.
    max_rows = max(8, budget // (4 * bytes_per_row))
    tile_h = min(max(height, 8), max_rows, 512)
    tile_h = max(8, (tile_h // 8) * 8)
    # Guarantee at least 2 row tiles so the "parallel" grid axis can shard
    # across both v7x TensorCores for small / medium canvases.
    if tile_h * 2 > height and height >= 16:
        tile_h = max(8, _round_up((height + 1) // 2, 8))
    return tile_h


def point_render_2d(centers, radius, viewport, height, width):
    """centers: float32[N, 2]; returns uint8[height, width, 4] RGBA image."""
    vx, vy, vw, vh = (float(v) for v in viewport)
    centers = jnp.asarray(centers, jnp.float32)
    height = int(height)
    width = int(width)

    # Viewport -> pixel-space transform (cheap glue, plain JAX).
    cx_px = (centers[:, 0] - vx) / vw * float(width)
    cy_px = float(height) - (centers[:, 1] - vy) / vh * float(height)

    n_centers = int(centers.shape[0])

    # Lane-dense padded canvas: render int32[height_pad, width_pad] and slice
    # to (height, width) in the wrapper -- avoids masked partial vector stores
    # and keeps every block shape (8, 128)-aligned.
    width_pad = _round_up(width, 128)
    tile_h = _pick_tile_h(height, width_pad)
    height_pad = _round_up(height, tile_h)
    n_tiles = height_pad // tile_h

    kernel = functools.partial(
        _render_kernel,
        tile_h=tile_h,
        width=width_pad,
        n_centers=n_centers,
        r=float(radius),
        r2=float(radius) * float(radius),
    )

    packed = pl.pallas_call(
        kernel,
        out_shape=jax.ShapeDtypeStruct((height_pad, width_pad), jnp.int32),
        grid=(n_tiles,),
        in_specs=[
            # Whole center lists live in SMEM (scalar reads inside the loop).
            pl.BlockSpec(memory_space=pltpu.MemorySpace.SMEM),
            pl.BlockSpec(memory_space=pltpu.MemorySpace.SMEM),
        ],
        out_specs=pl.BlockSpec((tile_h, width_pad), lambda i: (i, 0)),
        compiler_params=pltpu.CompilerParams(
            dimension_semantics=("parallel",)
        ),
    )(cx_px, cy_px)

    # int32[Hp, Wp] -> uint8[Hp, Wp, 4]; byte 0 is the low (little-endian)
    # byte, i.e. R, matching np.array(PIL RGBA image). Slice off the padding.
    rgba = lax.bitcast_convert_type(packed, jnp.uint8)
    return rgba[:height, :width, :]


if __name__ == "__main__":
    key = jax.random.PRNGKey(0)
    n_points = 8
    height, width = 64, 128
    radius = 4.0
    viewport = [0.0, 0.0, 1.0, 1.0]  # [vx, vy, vw, vh]

    # Deterministic example centers inside the viewport.
    centers = jax.random.uniform(key, (n_points, 2), dtype=jnp.float32)

    img = point_render_2d(centers, radius, viewport, height, width)
    img = jax.block_until_ready(img)

    assert img.shape == (height, width, 4)
    assert img.dtype == jnp.uint8
    # Sanity: R and A channels are always 255; some red pixels were drawn and
    # some white background remains.
    assert bool((img[..., 0] == 255).all())
    assert bool((img[..., 3] == 255).all())
    assert bool((img[..., 1] == 0).any())
    assert bool((img[..., 1] == 255).any())

    print("KERNEL_OK")
</pallas_src>

<mosaic_0001>
module attributes {stable_mosaic.version = 11 : i64} {
  func.func @_render_kernel(%arg0: i32, %arg1: memref<8xf32, #tpu.memory_space<smem>>, %arg2: memref<8xf32, #tpu.memory_space<smem>>, %arg3: memref<32x128xi32, #tpu.memory_space<vmem>>) attributes {dimension_semantics = [#tpu.dimension_semantics<parallel>], iteration_bounds = array<i64: 2>, scalar_prefetch = 0 : i64, scratch_operands = 0 : i64, tpu.core_type = #tpu.core_type<tc>, window_params = [{transform_indices = @transform_0, window_bounds = array<i64: 8>}, {transform_indices = @transform_1, window_bounds = array<i64: 8>}, {transform_indices = @transform_2, window_bounds = array<i64: 32, 128>}]} {
    %c32_i32 = arith.constant 32 : i32
    %0 = arith.muli %arg0, %c32_i32 : i32
    %1 = tpu.iota {dimensions = array<i32: 0>} : vector<32x1xi32>
    %2 = vector.broadcast %0 : i32 to vector<32x1xi32>
    %3 = arith.addi %1, %2 : vector<32x1xi32>
    %4 = arith.sitofp %3 : vector<32x1xi32> to vector<32x1xf32>
    %5 = tpu.iota {dimensions = array<i32: 1>} : vector<1x128xi32>
    %6 = arith.sitofp %5 : vector<1x128xi32> to vector<1x128xf32>
    %false = arith.constant false
    %7 = vector.broadcast %false : i1 to vector<32x128xi1>
    %c0 = arith.constant 0 : index
    %8 = memref.load %arg2[%c0] : memref<8xf32, #tpu.memory_space<smem>>
    %9 = vector.broadcast %8 : f32 to vector<32x1xf32>
    %10 = arith.subf %4, %9 : vector<32x1xf32>
    %11 = arith.mulf %10, %10 : vector<32x1xf32>
    %cst = arith.constant 1.600000e+01 : f32
    %12 = vector.broadcast %cst : f32 to vector<32x1xf32>
    %13 = arith.subf %12, %11 : vector<32x1xf32>
    %c0_0 = arith.constant 0 : index
    %14 = memref.load %arg1[%c0_0] : memref<8xf32, #tpu.memory_space<smem>>
    %15 = vector.broadcast %14 : f32 to vector<1x128xf32>
    %16 = arith.subf %6, %15 : vector<1x128xf32>
    %17 = arith.mulf %16, %16 : vector<1x128xf32>
    %18 = vector.broadcast %17 : vector<1x128xf32> to vector<32x128xf32>
    %19 = vector.broadcast %13 : vector<32x1xf32> to vector<32x128xf32>
    %20 = arith.cmpf ole, %18, %19 : vector<32x128xf32>
    %21 = arith.ori %7, %20 : vector<32x128xi1>
    %c1 = arith.constant 1 : index
    %22 = memref.load %arg2[%c1] : memref<8xf32, #tpu.memory_space<smem>>
    %23 = vector.broadcast %22 : f32 to vector<32x1xf32>
    %24 = arith.subf %4, %23 : vector<32x1xf32>
    %25 = arith.mulf %24, %24 : vector<32x1xf32>
    %cst_1 = arith.constant 1.600000e+01 : f32
    %26 = vector.broadcast %cst_1 : f32 to vector<32x1xf32>
    %27 = arith.subf %26, %25 : vector<32x1xf32>
    %c1_2 = arith.constant 1 : index
    %28 = memref.load %arg1[%c1_2] : memref<8xf32, #tpu.memory_space<smem>>
    %29 = vector.broadcast %28 : f32 to vector<1x128xf32>
    %30 = arith.subf %6, %29 : vector<1x128xf32>
    %31 = arith.mulf %30, %30 : vector<1x128xf32>
    %32 = vector.broadcast %31 : vector<1x128xf32> to vector<32x128xf32>
    %33 = vector.broadcast %27 : vector<32x1xf32> to vector<32x128xf32>
    %34 = arith.cmpf ole, %32, %33 : vector<32x128xf32>
    %35 = arith.ori %21, %34 : vector<32x128xi1>
    %c2 = arith.constant 2 : index
    %36 = memref.load %arg2[%c2] : memref<8xf32, #tpu.memory_space<smem>>
    %37 = vector.broadcast %36 : f32 to vector<32x1xf32>
    %38 = arith.subf %4, %37 : vector<32x1xf32>
    %39 = arith.mulf %38, %38 : vector<32x1xf32>
    %cst_3 = arith.constant 1.600000e+01 : f32
    %40 = vector.broadcast %cst_3 : f32 to vector<32x1xf32>
    %41 = arith.subf %40, %39 : vector<32x1xf32>
    %c2_4 = arith.constant 2 : index
    %42 = memref.load %arg1[%c2_4] : memref<8xf32, #tpu.memory_space<smem>>
    %43 = vector.broadcast %42 : f32 to vector<1x128xf32>
    %44 = arith.subf %6, %43 : vector<1x128xf32>
    %45 = arith.mulf %44, %44 : vector<1x128xf32>
    %46 = vector.broadcast %45 : vector<1x128xf32> to vector<32x128xf32>
    %47 = vector.broadcast %41 : vector<32x1xf32> to vector<32x128xf32>
    %48 = arith.cmpf ole, %46, %47 : vector<32x128xf32>
    %49 = arith.ori %35, %48 : vector<32x128xi1>
    %c3 = arith.constant 3 : index
    %50 = memref.load %arg2[%c3] : memref<8xf32, #tpu.memory_space<smem>>
    %51 = vector.broadcast %50 : f32 to vector<32x1xf32>
    %52 = arith.subf %4, %51 : vector<32x1xf32>
    %53 = arith.mulf %52, %52 : vector<32x1xf32>
    %cst_5 = arith.constant 1.600000e+01 : f32
    %54 = vector.broadcast %cst_5 : f32 to vector<32x1xf32>
    %55 = arith.subf %54, %53 : vector<32x1xf32>
    %c3_6 = arith.constant 3 : index
    %56 = memref.load %arg1[%c3_6] : memref<8xf32, #tpu.memory_space<smem>>
    %57 = vector.broadcast %56 : f32 to vector<1x128xf32>
    %58 = arith.subf %6, %57 : vector<1x128xf32>
    %59 = arith.mulf %58, %58 : vector<1x128xf32>
    %60 = vector.broadcast %59 : vector<1x128xf32> to vector<32x128xf32>
    %61 = vector.broadcast %55 : vector<32x1xf32> to vector<32x128xf32>
    %62 = arith.cmpf ole, %60, %61 : vector<32x128xf32>
    %63 = arith.ori %49, %62 : vector<32x128xi1>
    %c4 = arith.constant 4 : index
    %64 = memref.load %arg2[%c4] : memref<8xf32, #tpu.memory_space<smem>>
    %65 = vector.broadcast %64 : f32 to vector<32x1xf32>
    %66 = arith.subf %4, %65 : vector<32x1xf32>
    %67 = arith.mulf %66, %66 : vector<32x1xf32>
    %cst_7 = arith.constant 1.600000e+01 : f32
    %68 = vector.broadcast %cst_7 : f32 to vector<32x1xf32>
    %69 = arith.subf %68, %67 : vector<32x1xf32>
    %c4_8 = arith.constant 4 : index
    %70 = memref.load %arg1[%c4_8] : memref<8xf32, #tpu.memory_space<smem>>
    %71 = vector.broadcast %70 : f32 to vector<1x128xf32>
    %72 = arith.subf %6, %71 : vector<1x128xf32>
    %73 = arith.mulf %72, %72 : vector<1x128xf32>
    %74 = vector.broadcast %73 : vector<1x128xf32> to vector<32x128xf32>
    %75 = vector.broadcast %69 : vector<32x1xf32> to vector<32x128xf32>
    %76 = arith.cmpf ole, %74, %75 : vector<32x128xf32>
    %77 = arith.ori %63, %76 : vector<32x128xi1>
    %c5 = arith.constant 5 : index
    %78 = memref.load %arg2[%c5] : memref<8xf32, #tpu.memory_space<smem>>
    %79 = vector.broadcast %78 : f32 to vector<32x1xf32>
    %80 = arith.subf %4, %79 : vector<32x1xf32>
    %81 = arith.mulf %80, %80 : vector<32x1xf32>
    %cst_9 = arith.constant 1.600000e+01 : f32
    %82 = vector.broadcast %cst_9 : f32 to vector<32x1xf32>
    %83 = arith.subf %82, %81 : vector<32x1xf32>
    %c5_10 = arith.constant 5 : index
    %84 = memref.load %arg1[%c5_10] : memref<8xf32, #tpu.memory_space<smem>>
    %85 = vector.broadcast %84 : f32 to vector<1x128xf32>
    %86 = arith.subf %6, %85 : vector<1x128xf32>
    %87 = arith.mulf %86, %86 : vector<1x128xf32>
    %88 = vector.broadcast %87 : vector<1x128xf32> to vector<32x128xf32>
    %89 = vector.broadcast %83 : vector<32x1xf32> to vector<32x128xf32>
    %90 = arith.cmpf ole, %88, %89 : vector<32x128xf32>
    %91 = arith.ori %77, %90 : vector<32x128xi1>
    %c6 = arith.constant 6 : index
    %92 = memref.load %arg2[%c6] : memref<8xf32, #tpu.memory_space<smem>>
    %93 = vector.broadcast %92 : f32 to vector<32x1xf32>
    %94 = arith.subf %4, %93 : vector<32x1xf32>
    %95 = arith.mulf %94, %94 : vector<32x1xf32>
    %cst_11 = arith.constant 1.600000e+01 : f32
    %96 = vector.broadcast %cst_11 : f32 to vector<32x1xf32>
    %97 = arith.subf %96, %95 : vector<32x1xf32>
    %c6_12 = arith.constant 6 : index
    %98 = memref.load %arg1[%c6_12] : memref<8xf32, #tpu.memory_space<smem>>
    %99 = vector.broadcast %98 : f32 to vector<1x128xf32>
    %100 = arith.subf %6, %99 : vector<1x128xf32>
    %101 = arith.mulf %100, %100 : vector<1x128xf32>
    %102 = vector.broadcast %101 : vector<1x128xf32> to vector<32x128xf32>
    %103 = vector.broadcast %97 : vector<32x1xf32> to vector<32x128xf32>
    %104 = arith.cmpf ole, %102, %103 : vector<32x128xf32>
    %105 = arith.ori %91, %104 : vector<32x128xi1>
    %c7 = arith.constant 7 : index
    %106 = memref.load %arg2[%c7] : memref<8xf32, #tpu.memory_space<smem>>
    %107 = vector.broadcast %106 : f32 to vector<32x1xf32>
    %108 = arith.subf %4, %107 : vector<32x1xf32>
    %109 = arith.mulf %108, %108 : vector<32x1xf32>
    %cst_13 = arith.constant 1.600000e+01 : f32
    %110 = vector.broadcast %cst_13 : f32 to vector<32x1xf32>
    %111 = arith.subf %110, %109 : vector<32x1xf32>
    %c7_14 = arith.constant 7 : index
    %112 = memref.load %arg1[%c7_14] : memref<8xf32, #tpu.memory_space<smem>>
    %113 = vector.broadcast %112 : f32 to vector<1x128xf32>
    %114 = arith.subf %6, %113 : vector<1x128xf32>
    %115 = arith.mulf %114, %114 : vector<1x128xf32>
    %116 = vector.broadcast %115 : vector<1x128xf32> to vector<32x128xf32>
    %117 = vector.broadcast %111 : vector<32x1xf32> to vector<32x128xf32>
    %118 = arith.cmpf ole, %116, %117 : vector<32x128xf32>
    %119 = arith.ori %105, %118 : vector<32x128xi1>
    %c-16776961_i32 = arith.constant -16776961 : i32
    %c-1_i32 = arith.constant -1 : i32
    %120 = vector.broadcast %c-16776961_i32 : i32 to vector<32x128xi32>
    %121 = vector.broadcast %c-1_i32 : i32 to vector<32x128xi32>
    %122 = arith.select %119, %120, %121 : vector<32x128xi1>, vector<32x128xi32>
    %c0_15 = arith.constant 0 : index
    %c0_16 = arith.constant 0 : index
    %123 = vector.load %arg3[%c0_15, %c0_16] : memref<32x128xi32, #tpu.memory_space<vmem>>, vector<32x128xi32>
    tpu.vector_store %arg3[%c0_15, %c0_16], %122 {strides = array<i32>} : memref<32x128xi32, #tpu.memory_space<vmem>>, vector<32x128xi32>,
    return
  }
  func.func @transform_0(%arg0: i32) -> i32 {
    %c0_i32 = arith.constant 0 : i32
    %c0_i32_0 = arith.constant 0 : i32
    return %c0_i32 : i32
  }
  func.func @transform_1(%arg0: i32) -> i32 {
    %c0_i32 = arith.constant 0 : i32
    %c0_i32_0 = arith.constant 0 : i32
    return %c0_i32 : i32
  }
  func.func @transform_2(%arg0: i32) -> (i32, i32) {
    %c0_i32 = arith.constant 0 : i32
    %c0_i32_0 = arith.constant 0 : i32
    return %arg0, %c0_i32 : i32, i32
  }
}

</mosaic_0001>

<bundles_post_ra>
// kernel: tpu_custom_call.1
= control target key start
LH: loop header
LB: loop body
LE: loop exit
PB: predicated region body
PF: predicated region fallthrough
CT: control target
= control target key end

     0   :  { %7 = vsyncpa [#allocation4], 0  ;;  %s1054_s0 = inlined_call_operand.hbm [shape: f32[8], index: 0, kind: input, shape index: {}]   ;;  %s1055_s1 = inlined_call_operand.hbm [shape: f32[8], index: 1, kind: input, shape index: {}]   ;;  %s1056_s2 = inlined_call_operand.hbm [shape: s32[64,128], index: 2, kind: output, shape index: {}]  }
   0x1   :  { %8 = vsyncpa [#allocation6], 0 }
   0x2   :  { %9 = vsyncpa [#allocation3], 0 }
   0x3   :  { %11 = vsyncpa [#allocation3 + $0x1], 0  ;;  %s682_s9 = smov 0   ;;  %s684_s10 = smov 0  }
   0x4   :  { %s686_s11 = smov 0   ;;  %s688_s12 = smov 0  }
   0x5 LB: > { %s703_s13 = sadd.s32 4294967295, %s660_s12   ;;  %s468_s14 = sadd.s32 4294967294, %s660_s12   ;;  %s660_s12 = sphi %s688_s12, %s1088_s12   ;;  %s656_s11 = sphi %s686_s11, %s1087_s11   ;;  %s652_s10 = sphi %s684_s10, %s1086_s10   ;;  %s648_s9 = sphi %s682_s9, %s1085_s9  }
   0x6   : > { %s707_s15 = sadd.s32 1, %s660_s12   ;;  %s66_s16 = sadd.s32 1, %s656_s11 }
   0x7   : > { %s63_s17 = ssub.s32 %s660_s12, %s707_s15  ;;  %p76_p0 = scmp.ne.s32.totalorder %s656_s11, %s652_s10 }
   0x8   : > { %p64_p1 = scmp.eq.s32.totalorder %s63_s17, 0  ;;  %p77_p2 = scmp.eq.s32.totalorder %s703_s13, 1 }
   0x9   : > { %p82_p3 = scmp.ne.s32.totalorder %s652_s10, %s648_s9  ;;  %p83_p4 = scmp.eq.s32.totalorder %s468_s14, 1 }
   0xa   : > { %s718_s18 = scalar_select %p64_p1, %s656_s11, %s66_s16  }
   0xb   : > { %p720_p5 = por %p77_p2, %p76_p0  ;;  %p724_p6 = por %p83_p4, %p82_p3 }
   0xc   : > { %p469_p7 = scmp.ge.s32.totalorder %s660_s12, 1  ;;  %p90_p8 = scmp.lt.s32.totalorder %s660_s12, 3 }
   0xd   : > { %p518_p9 = scmp.eq.s32.totalorder %s703_s13, 0  ;;  %s102_s23 = sshll.u32 %s1054_s0, 4  ;;  %s103_s23 = int_to_ptr.hbm [resolvable:$true] %s102_s23 }
   0xe   : > { %p91_p10 = pnand %p469_p7, %p90_p8  ;;  %s112_s26 = sshll.u32 %s1055_s1, 4  ;;  %s113_s26 = int_to_ptr.hbm [resolvable:$true] %s112_s26 }
   0xf   : > { %s662_s27 = smov [#allocation2]   ;;  %s663_s28 = smov [#allocation5]  }
  0x10   : > { %p507_p11 = pneg %p91_p10 }
  0x11   : > { %125 = sbr.rel (%p91_p10) target bundleno = 86 (0x56), region = 28 }
  0x12   : > { %p508_p12 = pnand %p518_p9, %p507_p11 }
  0x14   : > { %510 = dma.hbm_to_smem (!%p508_p12), %s103_s23, 16, %s662_s27, [#allocation4]  }
  0x15   : > { %513 = dma.hbm_to_smem (!%p508_p12), %s113_s26, 16, %s663_s28, [#allocation6]  }
  0x16   : > { %635 = dma.done.wait (%p518_p9), [#allocation4], 16  }
  0x17   : > { %637 = vsyncadd (%p518_p9), [#allocation4], 4294967280 }
  0x18   : > { %639 = dma.done.wait (%p518_p9), [#allocation6], 16  }
  0x19   : > { %641 = vsyncadd (%p518_p9), [#allocation6], 4294967280 }
  0x1a   : > { %137 = sfence }
  0x1b   : > { %s476_s29 = sshll.u32 %s703_s13, 5  ;;  %v151_v0 = vlaneseq  ;;  %s168_s30 = sld [smem:[#allocation5]] }
  0x1c   : > { %v156_v1 = vstv %s476_s29  ;;  %s182_s3 = sld [smem:[#allocation2]]  ;;  %s146_s27 = sand.u32 1, %s652_s10  }
  0x1d   : > { %v152_v2 = vshrl.u32 %v151_v0, 7  ;;  %v166_v3 = vand.u32 127, %v151_v0  ;;  %s477_s4 = sld [smem:[#allocation5 + $0x1]]  ;;  %s475_s28 = sshll.u32 %s146_s27, 5 }
  0x1e   : > { %s478_s5 = sld [smem:[#allocation2 + $0x1]] }
  0x1f   : > { %v157_v4 = vadd.s32 %v156_v1, %v152_v2  ;;  %v153_v5 = vadd.s32 8, %v152_v2  ;;  %v154_v6 = vadd.s32 16, %v152_v2  ;;  %v750_v7 = vcvt.s32.f32 %v166_v3  ;;  %s479_s6 = sld [smem:[#allocation5 + $0x2]] }
  0x20   : > { %v155_v8 = vadd.s32 24, %v152_v2  ;;  %s754_s7 = sld [smem:[#allocation2 + $0x2]] }
  0x21   : > { %v752_v9 = vcvt.s32.f32 %v157_v4  ;;  %v158_v10 = vadd.s32 %v156_v1, %v153_v5  ;;  %v159_v11 = vadd.s32 %v156_v1, %v154_v6  ;;  %v756_v12 = vstv %s168_s30  ;;  %s481_s8 = sld [smem:[#allocation5 + $0x3]]  ;;  %s923_s30 = scalar_lea.vmem [#allocation7], %s475_s28 }
  0x22   : > { %v160_v13 = vadd.s32 %v156_v1, %v155_v8  ;;  %v183_v15 = vstv %s182_s3  ;;  %s760_s14 = sld [smem:[#allocation2 + $0x3]]  ;;  %s393_s13 = sshll.u32 %s923_s30, 4  ;;  %s394_s13 = int_to_ptr.vmem [resolvable:$true] %s393_s13 }
  0x23   : > { %v170_v14 = vsub.f32 %v752_v9, %v756_v12  ;;  %v762_v16 = vcvt.s32.f32 %v158_v10  ;;  %v184_v17 = vsub.f32 %v750_v7, %v183_v15  ;;  %v765_v18 = vstv %s477_s4  ;;  %s767_s16 = sld [smem:[#allocation5 + $0x4]] }
  0x24   : > { %v769_v19 = vcvt.s32.f32 %v159_v11  ;;  %v771_v20 = vcvt.s32.f32 %v160_v13  ;;  %v192_v22 = vsub.f32 %v752_v9, %v765_v18  ;;  %v205_v23 = vstv %s478_s5  ;;  %s775_s17 = sld [smem:[#allocation2 + $0x4]]  ;;  %s392_s5 = scalar_lea.hbm %s1056_s2, %s476_s29 }
  0x25   : > { %v174_v21 = vmul.f32 %v170_v14, %v170_v14  ;;  %v171_v24 = vsub.f32 %v762_v16, %v756_v12  ;;  %v779_v25 = vmul.f32 %v184_v17, %v184_v17  ;;  %v206_v26 = vsub.f32 %v750_v7, %v205_v23  ;;  %s784_s21 = sld [smem:[#allocation5 + $0x5]]  ;;  %s395_s29 = sshll.u32 %s392_s5, 4  ;;  %s396_s29 = int_to_ptr.hbm [resolvable:$true] %s395_s29 }
  0x26   : > { %v782_v27 = vstv %s479_s6  ;;  %v193_v28 = vsub.f32 %v762_v16, %v765_v18  ;;  %v196_v30 = vmul.f32 %v192_v22, %v192_v22  ;;  %v231_v32 = vstv %s754_s7  ;;  %s791_s22 = sld [smem:[#allocation2 + $0x5]]  ;;  %s381_s6 = scalar_lea.sflag [#allocation3], %s146_s27 }
  0x27   : > { %v178_v29 = vsub.f32 16.0, %v174_v21  ;;  %v218_v31 = vsub.f32 %v752_v9, %v782_v27  ;;  %v793_v33 = vmul.f32 %v206_v26, %v206_v26  ;;  %v232_v34 = vsub.f32 %v750_v7, %v231_v32  ;;  %s798_s23 = sld [smem:[#allocation5 + $0x6]]  ;;  %s604_s7 = sshra.s32 %s396_s29, 4  ;;  %s605_s7 = int_to_ptr.hbm [resolvable:$true] %s604_s7 }
  0x28   : > { %v796_v35 = vstv %s481_s8  ;;  %v175_v36 = vmul.f32 %v171_v24, %v171_v24  ;;  %v200_v38 = vsub.f32 16.0, %v196_v30  ;;  %s807_s24 = sld [smem:[#allocation2 + $0x6]]  ;;  %v257_v42 = vstv %s760_s14  ;;  %s606_s8 = scalar_lea.hbm %s605_s7, 32 }
  0x29   : > { %vm801_vm0 = vcmp.le.f32.partialorder %v779_v25, %v178_v29  ;;  %v222_v39 = vmul.f32 %v218_v31, %v218_v31  ;;  %v244_v40 = vsub.f32 %v752_v9, %v796_v35  ;;  %v809_v41 = vmul.f32 %v232_v34, %v232_v34  ;;  %s489_s25 = sld [smem:[#allocation5 + $0x7]]  ;;  %p607_p13 = scmp.ne.s32.totalorder %s605_s7, %s606_s8 }
  0x2a   : > { %v813_v43 = vstv %s767_s16  ;;  %v179_v44 = vsub.f32 16.0, %v175_v36  ;;  %vm816_vm1 = vcmp.le.f32.partialorder %v793_v33, %v200_v38  ;;  %v258_v48 = vsub.f32 %v750_v7, %v257_v42  ;;  %s821_s26 = sld [smem:[#allocation2 + $0x7]]  ;;  %p611_p2 = scmp.lt.s32.totalorder %s605_s7, %s1056_s2 }
  0x2b   : > { %v226_v46 = vsub.f32 16.0, %v222_v39  ;;  %v248_v47 = vmul.f32 %v244_v40, %v244_v40  ;;  %vm212_vm2 = vmor %vm801_vm0, %vm816_vm1  ;;  %v270_v49 = vsub.f32 %v752_v9, %v813_v43  ;;  %v283_v50 = vstv %s775_s17  ;;  %p608_p0 = pnand %p607_p13, %p720_p5  ;;  %s610_s17 = scalar_lea.hbm %s1056_s2, 64 }
  0x2c   : > { %v831_v51 = vstv %s784_s21  ;;  %vm834_vm3 = vcmp.le.f32.partialorder %v779_v25, %v179_v44  ;;  %v839_v54 = vmul.f32 %v258_v48, %v258_v48  ;;  %v284_v55 = vsub.f32 %v750_v7, %v283_v50  ;;  %p612_p3 = scmp.lt.s32.totalorder %s610_s17, %s606_s8 }
  0x2d   : > { %vm234_vm4 = vcmp.le.f32.partialorder %v809_v41, %v226_v46  ;;  %v252_v53 = vsub.f32 16.0, %v248_v47  ;;  %v274_v57 = vmul.f32 %v270_v49, %v270_v49  ;;  %v296_v58 = vsub.f32 %v752_v9, %v831_v51  ;;  %p609_p1 = pneg %p608_p0 }
  0x2e   : > { %vm842_vm5 = vmor %vm212_vm2, %vm234_vm4  ;;  %v309_v59 = vstv %s791_s22  ;;  %v850_v60 = vstv %s798_s23  ;;  %v857_v62 = vmul.f32 %v284_v55, %v284_v55  ;;  %v335_v3 = vstv %s807_s24  ;;  %p613_p4 = por %p612_p3, %p611_p2 }
  0x2f   : > { %vm853_vm6 = vcmp.le.f32.partialorder %v839_v54, %v252_v53  ;;  %v310_v63 = vsub.f32 %v750_v7, %v309_v59  ;;  %v322_v0 = vsub.f32 %v752_v9, %v850_v60  ;;  %v278_v1 = vsub.f32 16.0, %v274_v57 }
  0x30   : > { %vm264_vm7 = vmor %vm842_vm5, %vm853_vm6  ;;  %v300_v2 = vmul.f32 %v296_v58, %v296_v58  ;;  %v867_v4 = vstv %s489_s25  ;;  %v336_v8 = vsub.f32 %v750_v7, %v335_v3  ;;  %v361_v13 = vstv %s821_s26  ;;  %p614_p7 = pnand %p613_p4, %p609_p1 }
  0x31   : > { %v870_v5 = vmul.f32 %v310_v63, %v310_v63  ;;  %v326_v6 = vmul.f32 %v322_v0, %v322_v0  ;;  %v348_v10 = vsub.f32 %v752_v9, %v867_v4  ;;  %vm286_vm8 = vcmp.le.f32.partialorder %v857_v62, %v278_v1 }
  0x32   : > { %v304_v11 = vsub.f32 16.0, %v300_v2  ;;  %v197_v14 = vmul.f32 %v193_v28, %v193_v28  ;;  %vm877_vm9 = vmor %vm264_vm7, %vm286_vm8  ;;  %v881_v21 = vmul.f32 %v336_v8, %v336_v8  ;;  %v362_v23 = vsub.f32 %v750_v7, %v361_v13 }
  0x33   : > { %v330_v17 = vsub.f32 16.0, %v326_v6  ;;  %v352_v22 = vmul.f32 %v348_v10, %v348_v10  ;;  %v219_v24 = vsub.f32 %v762_v16, %v782_v27  ;;  %v245_v26 = vsub.f32 %v762_v16, %v796_v35 }
  0x34   : > { %vm312_vm10 = vcmp.le.f32.partialorder %v870_v5, %v304_v11  ;;  %v201_v9 = vsub.f32 16.0, %v197_v14  ;;  %v894_v29 = vmul.f32 %v362_v23, %v362_v23  ;;  %v271_v7 = vsub.f32 %v762_v16, %v813_v43 }
  0x35   : > { %vm316_vm11 = vmor %vm877_vm9, %vm312_vm10  ;;  %vm338_vm12 = vcmp.le.f32.partialorder %v881_v21, %v330_v17  ;;  %v356_v28 = vsub.f32 16.0, %v352_v22  ;;  %v223_v32 = vmul.f32 %v219_v24, %v219_v24  ;;  %v249_v34 = vmul.f32 %v245_v26, %v245_v26 }
  0x36   : > { %vm898_vm13 = vmor %vm316_vm11, %vm338_vm12  ;;  %vm903_vm14 = vcmp.le.f32.partialorder %v793_v33, %v201_v9  ;;  %v297_v36 = vsub.f32 %v762_v16, %v831_v51  ;;  %v275_v37 = vmul.f32 %v271_v7, %v271_v7  ;;  %v323_v38 = vsub.f32 %v762_v16, %v850_v60 }
  0x37   : > { %vm364_vm15 = vcmp.le.f32.partialorder %v894_v29, %v356_v28  ;;  %vm213_vm0 = vmor %vm834_vm3, %vm903_vm14  ;;  %v349_v39 = vsub.f32 %v762_v16, %v867_v4  ;;  %v227_v40 = vsub.f32 16.0, %v223_v32  ;;  %v253_v42 = vsub.f32 16.0, %v249_v34 }
  0x38   : > { %vm368_vm1 = vmor %vm898_vm13, %vm364_vm15  ;;  %v301_v44 = vmul.f32 %v297_v36, %v297_v36  ;;  %v172_v45 = vsub.f32 %v769_v19, %v756_v12  ;;  %v664_v46 = vmov 4294967295   ;;  %v279_v48 = vsub.f32 16.0, %v275_v37 }
  0x39   : > { %v372_v47 = vsel %vm368_vm1, 4278190335, %v664_v46  ;;  %v327_v49 = vmul.f32 %v323_v38, %v323_v38  ;;  %v353_v50 = vmul.f32 %v349_v39, %v349_v39  ;;  %vm235_vm2 = vcmp.le.f32.partialorder %v809_v41, %v227_v40 }
  0x3a   : > { %376 = vst [vmem:[%s923_s30] sm:$0xff] %v372_v47  ;;  %vm261_vm4 = vcmp.le.f32.partialorder %v839_v54, %v253_v42  ;;  %v305_v16 = vsub.f32 16.0, %v301_v44  ;;  %v176_v53 = vmul.f32 %v172_v45, %v172_v45  ;;  %vm239_vm5 = vmor %vm213_vm0, %vm235_vm2  ;;  %vm287_vm6 = vcmp.le.f32.partialorder %v857_v62, %v279_v48 }
  0x3b   : > { %v331_v55 = vsub.f32 16.0, %v327_v49  ;;  %v357_v56 = vsub.f32 16.0, %v353_v50  ;;  %v194_v57 = vsub.f32 %v769_v19, %v765_v18  ;;  %vm265_vm7 = vmor %vm239_vm5, %vm261_vm4  ;;  %v220_v52 = vsub.f32 %v769_v19, %v782_v27 }
  0x3c   : > { %vm937_vm8 = vcmp.le.f32.partialorder %v870_v5, %v305_v16  ;;  %v180_v59 = vsub.f32 16.0, %v176_v53  ;;  %v246_v61 = vsub.f32 %v769_v19, %v796_v35  ;;  %vm291_vm3 = vmor %vm265_vm7, %vm287_vm6  ;;  %v272_v1 = vsub.f32 %v769_v19, %v813_v43 }
  0x3d   : > { %vm339_vm9 = vcmp.le.f32.partialorder %v881_v21, %v331_v55  ;;  %vm947_vm10 = vcmp.le.f32.partialorder %v894_v29, %v357_v56  ;;  %v198_v0 = vmul.f32 %v194_v57, %v194_v57  ;;  %vm317_vm11 = vmor %vm291_vm3, %vm937_vm8  ;;  %v224_v3 = vmul.f32 %v220_v52, %v220_v52 }
  0x3e   : > { %vm956_vm12 = vcmp.le.f32.partialorder %v779_v25, %v180_v59  ;;  %v250_v6 = vmul.f32 %v246_v61, %v246_v61  ;;  %v298_v8 = vsub.f32 %v769_v19, %v831_v51  ;;  %vm343_vm13 = vmor %vm317_vm11, %vm339_vm9  ;;  %v276_v11 = vmul.f32 %v272_v1, %v272_v1 }
  0x3f   : > { %v202_v10 = vsub.f32 16.0, %v198_v0  ;;  %v324_v13 = vsub.f32 %v769_v19, %v850_v60  ;;  %v350_v14 = vsub.f32 %v769_v19, %v867_v4  ;;  %vm369_vm14 = vmor %vm343_vm13, %vm947_vm10  ;;  %v228_v15 = vsub.f32 16.0, %v224_v3 }
  0x40   : > { %v254_v17 = vsub.f32 16.0, %v250_v6  ;;  %v302_v22 = vmul.f32 %v298_v8, %v298_v8  ;;  %v173_v23 = vsub.f32 %v771_v20, %v756_v12  ;;  %v373_v9 = vsel %vm369_vm14, 4278190335, %v664_v46 }
  0x41   : > { %vm210_vm15 = vcmp.le.f32.partialorder %v793_v33, %v202_v10  ;;  %v280_v24 = vsub.f32 16.0, %v276_v11  ;;  %v328_v26 = vmul.f32 %v324_v13, %v324_v13  ;;  %377 = vst [vmem:[%s923_s30 + $0x8] sm:$0xff] %v373_v9  ;;  %vm236_vm1 = vcmp.le.f32.partialorder %v809_v41, %v228_v15 }
  0x42   : > { %vm214_vm0 = vmor %vm956_vm12, %vm210_vm15  ;;  %vm262_vm2 = vcmp.le.f32.partialorder %v839_v54, %v254_v17  ;;  %v306_v19 = vsub.f32 16.0, %v302_v22  ;;  %v354_v28 = vmul.f32 %v350_v14, %v350_v14  ;;  %v177_v7 = vmul.f32 %v173_v23, %v173_v23 }
  0x43   : > { %vm240_vm4 = vmor %vm214_vm0, %vm236_vm1  ;;  %vm288_vm5 = vcmp.le.f32.partialorder %v857_v62, %v280_v24  ;;  %v332_v12 = vsub.f32 16.0, %v328_v26  ;;  %v195_v30 = vsub.f32 %v771_v20, %v765_v18  ;;  %v221_v34 = vsub.f32 %v771_v20, %v782_v27 }
  0x44   : > { %vm266_vm6 = vmor %vm240_vm4, %vm262_vm2  ;;  %vm981_vm7 = vcmp.le.f32.partialorder %v870_v5, %v306_v19  ;;  %v358_v32 = vsub.f32 16.0, %v354_v28  ;;  %v247_v36 = vsub.f32 %v771_v20, %v796_v35  ;;  %v181_v37 = vsub.f32 16.0, %v177_v7 }
  0x45   : > { %vm292_vm8 = vmor %vm266_vm6, %vm288_vm5  ;;  %vm340_vm3 = vcmp.le.f32.partialorder %v881_v21, %v332_v12  ;;  %v199_v38 = vmul.f32 %v195_v30, %v195_v30  ;;  %v273_v18 = vsub.f32 %v771_v20, %v813_v43  ;;  %v225_v39 = vmul.f32 %v221_v34, %v221_v34 }
  0x46   : > { %vm318_vm9 = vmor %vm292_vm8, %vm981_vm7  ;;  %vm366_vm10 = vcmp.le.f32.partialorder %v894_v29, %v358_v32  ;;  %v251_v40 = vmul.f32 %v247_v36, %v247_v36  ;;  %v299_v27 = vsub.f32 %v771_v20, %v831_v51  ;;  %vm998_vm12 = vcmp.le.f32.partialorder %v779_v25, %v181_v37 }
  0x47   : > { %vm344_vm11 = vmor %vm318_vm9, %vm340_vm3  ;;  %v203_v42 = vsub.f32 16.0, %v199_v38  ;;  %v277_v43 = vmul.f32 %v273_v18, %v273_v18  ;;  %v325_v44 = vsub.f32 %v771_v20, %v850_v60  ;;  %v229_v45 = vsub.f32 16.0, %v225_v39 }
  0x48   : > { %vm370_vm13 = vmor %vm344_vm11, %vm366_vm10  ;;  %v255_v47 = vsub.f32 16.0, %v251_v40  ;;  %v303_v48 = vmul.f32 %v299_v27, %v299_v27  ;;  %v351_v51 = vsub.f32 %v771_v20, %v867_v4 }
  0x49   : > { %v374_v49 = vsel %vm370_vm13, 4278190335, %v664_v46  ;;  %vm211_vm14 = vcmp.le.f32.partialorder %v793_v33, %v203_v42  ;;  %v281_v25 = vsub.f32 16.0, %v277_v43  ;;  %v329_v50 = vmul.f32 %v325_v44, %v325_v44 }
  0x4a   : > { %378 = vst [vmem:[%s923_s30 + $0x10] sm:$0xff] %v374_v49  ;;  %vm215_vm15 = vmor %vm998_vm12, %vm211_vm14  ;;  %vm237_vm0 = vcmp.le.f32.partialorder %v809_v41, %v229_v45  ;;  %vm263_vm1 = vcmp.le.f32.partialorder %v839_v54, %v255_v47  ;;  %v307_v20 = vsub.f32 16.0, %v303_v48  ;;  %v355_v60 = vmul.f32 %v351_v51, %v351_v51 }
  0x4b   : > { %vm241_vm2 = vmor %vm215_vm15, %vm237_vm0  ;;  %vm289_vm4 = vcmp.le.f32.partialorder %v857_v62, %v281_v25  ;;  %v333_v33 = vsub.f32 16.0, %v329_v50 }
  0x4c   : > { %vm267_vm5 = vmor %vm241_vm2, %vm263_vm1  ;;  %vm315_vm6 = vcmp.le.f32.partialorder %v870_v5, %v307_v20  ;;  %v359_v4 = vsub.f32 16.0, %v355_v60 }
  0x4d   : > { %vm293_vm7 = vmor %vm267_vm5, %vm289_vm4  ;;  %vm341_vm8 = vcmp.le.f32.partialorder %v881_v21, %v333_v33 }
  0x4e   : > { %vm319_vm3 = vmor %vm293_vm7, %vm315_vm6  ;;  %vm367_vm9 = vcmp.le.f32.partialorder %v894_v29, %v359_v4 }
  0x4f   : > { %vm345_vm10 = vmor %vm319_vm3, %vm341_vm8 }
  0x50   : > { %vm371_vm11 = vmor %vm345_vm10, %vm367_vm9 }
  0x51   : > { %v375_v41 = vsel %vm371_vm11, 4278190335, %v664_v46 }
  0x52   : > { %379 = vst [vmem:[%s923_s30 + $0x18] sm:$0xff] %v375_v41 }
  0x53   : > { %617 = shalt.err (!%p614_p7)
}
  0x54   : > { %s665_s23 = smov 128   ;;  %s666_s24 = smov 8  }
  0x55   : > { %505 = dma.vmem_to_hbm [thread:$0]  (%p720_p5), %s394_s13, 512, %s396_s29, %s381_s6, %s665_s23, %s665_s23, %s666_s24  }
  0x56 PF: > { %p522_p8 = scmp.ge.s32.totalorder %s660_s12, 2  ;;  %s410_s25 = sand.u32 1, %s648_s9  }
  0x57   : > { %s411_s26 = scalar_lea.sflag [#allocation3], %s410_s25 }
  0x58   : > { %p515_p9 = pnand %p522_p8, %p724_p6 }
  0x5a   : > { %p516_p10 = pneg %p515_p9 }
  0x5c   : > { %643 = dma.done.wait (%p516_p10), %s411_s26, 512  }
  0x5d   : > { %645 = vsyncadd (%p516_p10), %s411_s26, 4294966784  ;;  %p14_p11 = scmp.ge.s32.totalorder %s707_s15, 4   ;;  %s1085_s9 = smov %s652_s10 }
  0x5e   : > { %s1086_s10 = smov %s656_s11  ;;  %s1087_s11 = smov %s718_s18 }
  0x5f   : > { %s1088_s12 = smov %s707_s15  ;;  %16 = sbr.rel (!%p14_p11) target bundleno = 5 (0x5), region = 69 }
  0x64   :  { %417 = vsyncpa [#allocation3], 1 }
  0x65   :  { %419 = vsyncpa [#allocation3 + $0x1], 1 }
  0x66   :  { %420 = vsyncpa [#allocation4], 1 }
  0x67   :  { %422 = vsyncpa [#allocation4 + $0x1], 1 }
  0x68   :  { %423 = vsyncpa [#allocation6], 1 }

</bundles_post_ra>
